<compile_context>
chip_gen: v7x
topology: tpu7x:2x2x1
jax: 0.10.0
libtpu: 0.0.40
codegen_flags: <defaults>
</compile_context>

<pallas_src>
import jax
import jax.numpy as jnp
import numpy as np
from jax.experimental import pallas as pl
from jax.experimental.pallas import tpu as pltpu

# ---- small, module-consistent sizes -----------------------------------------
BATCH = 2
SEQ = 8
MODEL_DIM = 32
FF_DIM = 64
NUM_HEADS = 4
HEAD_DIM = MODEL_DIM // NUM_HEADS
EPS = 1e-5  # nn.LayerNorm default

# MXU operand dtype.  Keep f32 so the forward matches the PyTorch module's
# numerics; on v6e/v7x at production sizes set this to jnp.bfloat16 (native
# MXU input format, halves HBM<->VMEM bytes) and loosen tolerances.
MXU_DTYPE = jnp.float32


# ---- kernel: one grid step == one batch element -------------------------------
def encoder_layer_kernel(x_ref, mask_ref, wqkv_ref, bqkv_ref, wo_ref, vecs_ref,
                         w1_ref, b1_ref, w2_ref, out_ref, attn_ref):
    S = x_ref.shape[1]
    D = x_ref.shape[2]
    H = NUM_HEADS
    HD = HEAD_DIM

    x = x_ref[0]                          # (S, D)  current batch element
    mask_bad = mask_ref[0] > 0.0          # (S, S)  True => masked (masked_fill)

    vecs = vecs_ref[...]                  # (4, D): [ln_gamma, ln_beta, b_o, b2]
    # pre-broadcast once (broadcast_in_dim is not CSE'd by JAX)
    gamma = jnp.broadcast_to(vecs[0:1], (S, D))
    beta = jnp.broadcast_to(vecs[1:2], (S, D))
    b_o = jnp.broadcast_to(vecs[2:3], (S, D))
    b2 = vecs[3:4]

    def layer_norm(z):
        m = jnp.mean(z, axis=-1, keepdims=True)
        v = jnp.mean(jnp.square(z - m), axis=-1, keepdims=True)
        return (z - m) * jax.lax.rsqrt(v + EPS) * gamma + beta

    # inputs = self.layer_norm(inputs)
    x1 = layer_norm(x)                    # (S, D)

    # fused Q/K/V projection: one (S, D) @ (D, 3D) MXU push
    qkv = jnp.dot(x1.astype(MXU_DTYPE), wqkv_ref[...].astype(MXU_DTYPE),
                  preferred_element_type=jnp.float32) + bqkv_ref[...]   # (S, 3D)

    scale = jnp.float32(1.0 / np.sqrt(HD))
    attn_sum = jnp.zeros((S, S), jnp.float32)
    attn_out = b_o                        # output projection accumulated per head
    for h in range(H):                    # static unroll over heads
        q_h = qkv[:, h * HD:(h + 1) * HD]
        k_h = qkv[:, D + h * HD:D + (h + 1) * HD]
        v_h = qkv[:, 2 * D + h * HD:2 * D + (h + 1) * HD]

        s = jnp.einsum('qd,kd->qk', q_h.astype(MXU_DTYPE), k_h.astype(MXU_DTYPE),
                       preferred_element_type=jnp.float32) * scale
        s = jnp.where(mask_bad, jnp.float32(-1e9), s)       # masked_fill(-1e9)
        s = s - jnp.max(s, axis=-1, keepdims=True)
        p_un = jnp.exp(s)
        # softmax denominator on the EUP (approx reciprocal), frees VALU slots
        p = p_un * pl.reciprocal(jnp.sum(p_un, axis=-1, keepdims=True), approx=True)
        attn_sum = attn_sum + p

        ctx_h = jnp.dot(p.astype(MXU_DTYPE), v_h.astype(MXU_DTYPE),
                        preferred_element_type=jnp.float32)             # (S, HD)
        # fused output projection for this head (no lane-dim concatenate)
        attn_out = attn_out + jnp.dot(ctx_h.astype(MXU_DTYPE),
                                      wo_ref[h].astype(MXU_DTYPE),
                                      preferred_element_type=jnp.float32)

    # residual adds the *normalized* input, then the SAME LayerNorm params reused
    y2 = layer_norm(attn_out + x1)        # (S, D)

    # position-wise feed forward: Linear -> ReLU -> Linear
    h1 = jnp.maximum(jnp.dot(y2.astype(MXU_DTYPE), w1_ref[...].astype(MXU_DTYPE),
                             preferred_element_type=jnp.float32) + b1_ref[...], 0.0)
    ff = jnp.dot(h1.astype(MXU_DTYPE), w2_ref[...].astype(MXU_DTYPE),
                 preferred_element_type=jnp.float32) + b2

    # output = dropout(ff + y2)  (identity in eval); direct per-batch store
    out_ref[0] = (ff + y2).astype(out_ref.dtype)
    attn_ref[0] = (attn_sum * jnp.float32(1.0 / H)).astype(attn_ref.dtype)


# ---- one-time parameter packing (init-side, NOT per forward) -------------------
def pack_params(params):
    (wq, bq, wk, bk, wv, bv, wo, bo, ln_g, ln_b, w1, b1, w2, b2) = params
    D = wq.shape[0]
    w_qkv = jnp.concatenate([wq, wk, wv], axis=1)            # (D, 3D)
    b_qkv = jnp.concatenate([bq, bk, bv], axis=1)            # (1, 3D)
    wo_heads = wo.reshape(NUM_HEADS, HEAD_DIM, D)            # (H, HD, D) row blocks
    vecs = jnp.concatenate([ln_g, ln_b, bo, b2], axis=0)     # (4, D)
    return (w_qkv, b_qkv, wo_heads, vecs, w1, b1, w2)


# ---- wrapper -------------------------------------------------------------------
@jax.jit
def encoder_layer(x, mask, packed):
    w_qkv, b_qkv, wo_heads, vecs, w1, b1, w2 = packed
    B, S, D = x.shape
    F = w1.shape[1]
    H, HD = NUM_HEADS, HEAD_DIM

    flops = B * (2 * S * D * 3 * D                # fused QKV
                 + 2 * 2 * H * S * S * HD         # scores + context
                 + 2 * S * D * D                  # output projection
                 + 2 * 2 * S * D * F)             # FFN (two matmuls)
    transcendentals = B * (H * S * S + H * S + 2 * S)   # exp + rcp + rsqrt
    bytes_accessed = (x.size + mask.size + w_qkv.size + b_qkv.size
                      + wo_heads.size + vecs.size + w1.size + b1.size + w2.size
                      + B * S * D + B * S * S) * 4

    # explicit full-array VMEM-resident blocks for every operand
    def full(a):
        nd = a.ndim
        return pl.BlockSpec(a.shape, lambda b, _nd=nd: (0,) * _nd)

    in_specs = [
        pl.BlockSpec((1, S, D), lambda b: (b, 0, 0)),   # x   : per-batch block
        pl.BlockSpec((1, S, S), lambda b: (b, 0, 0)),   # mask: per-batch block
        full(w_qkv), full(b_qkv), full(wo_heads), full(vecs),
        full(w1), full(b1), full(w2),
    ]
    out_specs = (
        pl.BlockSpec((1, S, D), lambda b: (b, 0, 0)),
        pl.BlockSpec((1, S, S), lambda b: (b, 0, 0)),
    )
    out_shape = (
        jax.ShapeDtypeStruct((B, S, D), x.dtype),
        jax.ShapeDtypeStruct((B, S, S), jnp.float32),
    )
    return pl.pallas_call(
        encoder_layer_kernel,
        grid=(B,),
        in_specs=in_specs,
        out_specs=out_specs,
        out_shape=out_shape,
        compiler_params=pltpu.CompilerParams(dimension_semantics=("parallel",)),
        cost_estimate=pl.CostEstimate(flops=flops,
                                      transcendentals=transcendentals,
                                      bytes_accessed=bytes_accessed),
    )(x, mask, w_qkv, b_qkv, wo_heads, vecs, w1, b1, w2)


# ---- pure-JAX reference (for correctness check) --------------------------------
def encoder_layer_ref(x, mask, params):
    (wq, bq, wk, bk, wv, bv, wo, bo, ln_g, ln_b, w1, b1, w2, b2) = params
    B, S, D = x.shape

    def ln(z):
        m = jnp.mean(z, -1, keepdims=True)
        v = jnp.mean(jnp.square(z - m), -1, keepdims=True)
        return (z - m) / jnp.sqrt(v + EPS) * ln_g[0] + ln_b[0]

    x1 = ln(x)
    q = x1 @ wq + bq[0]
    k = x1 @ wk + bk[0]
    v = x1 @ wv + bv[0]
    qh = q.reshape(B, S, NUM_HEADS, HEAD_DIM).transpose(0, 2, 1, 3)
    kh = k.reshape(B, S, NUM_HEADS, HEAD_DIM).transpose(0, 2, 1, 3)
    vh = v.reshape(B, S, NUM_HEADS, HEAD_DIM).transpose(0, 2, 1, 3)
    scores = jnp.einsum('bhqd,bhkd->bhqk', qh, kh) / jnp.sqrt(jnp.float32(HEAD_DIM))
    scores = jnp.where(mask[:, None] > 0, -1e9, scores)
    p = jax.nn.softmax(scores, axis=-1)
    ctx = jnp.einsum('bhqk,bhkd->bhqd', p, vh).transpose(0, 2, 1, 3).reshape(B, S, D)
    attn_out = ctx @ wo + bo[0]
    y2 = ln(attn_out + x1)
    ff = jnp.maximum(y2 @ w1 + b1[0], 0.0) @ w2 + b2[0]
    return ff + y2, jnp.mean(p, axis=1)


# ---- parameter init + run -------------------------------------------------------
def make_params(key):
    ks = jax.random.split(key, 8)

    def lin(k, din, dout):
        w = 0.05 * jax.random.normal(k, (din, dout), jnp.float32)
        b = 0.01 * jax.random.normal(jax.random.fold_in(k, 1), (1, dout), jnp.float32)
        return w, b

    wq, bq = lin(ks[0], MODEL_DIM, MODEL_DIM)
    wk, bk = lin(ks[1], MODEL_DIM, MODEL_DIM)
    wv, bv = lin(ks[2], MODEL_DIM, MODEL_DIM)
    wo, bo = lin(ks[3], MODEL_DIM, MODEL_DIM)
    ln_g = jnp.ones((1, MODEL_DIM), jnp.float32) + 0.1 * jax.random.normal(ks[4], (1, MODEL_DIM))
    ln_b = 0.1 * jax.random.normal(ks[5], (1, MODEL_DIM), jnp.float32)
    w1, b1 = lin(ks[6], MODEL_DIM, FF_DIM)
    w2, b2 = lin(ks[7], FF_DIM, MODEL_DIM)
    return (wq, bq, wk, bk, wv, bv, wo, bo, ln_g, ln_b, w1, b1, w2, b2)


if __name__ == "__main__":
    key = jax.random.PRNGKey(0)
    k_x, k_p = jax.random.split(key)
    x = jax.random.normal(k_x, (BATCH, SEQ, MODEL_DIM), jnp.float32)
    # mask: nonzero => masked (torch masked_fill convention); mask out the last
    # key position of batch element 1 to exercise the masking path.
    mask = jnp.zeros((BATCH, SEQ, SEQ), jnp.float32)
    mask = mask.at[1, :, -1].set(1.0)
    params = make_params(k_p)
    packed = pack_params(params)          # one-time, init-side packing

    out, attn = encoder_layer(x, mask, packed)
    out, attn = jax.block_until_ready((out, attn))

    out_r, attn_r = encoder_layer_ref(x, mask, params)
    # tolerance slightly looser than pure-f32: the softmax denominator uses the
    # EUP approximate reciprocal (pl.reciprocal(approx=True)).
    assert np.allclose(np.asarray(out), np.asarray(out_r), atol=2e-3, rtol=2e-3)
    assert np.allclose(np.asarray(attn), np.asarray(attn_r), atol=2e-3, rtol=2e-3)
    assert out.shape == (BATCH, SEQ, MODEL_DIM)
    assert attn.shape == (BATCH, SEQ, SEQ)
    print("KERNEL_OK")
</pallas_src>

<mosaic_0001>
module attributes {stable_mosaic.version = 11 : i64} {
  func.func @encoder_layer_kernel(%arg0: i32, %arg1: memref<1x8x32xf32, #tpu.memory_space<vmem>>, %arg2: memref<1x8x8xf32, #tpu.memory_space<vmem>>, %arg3: memref<32x96xf32, #tpu.memory_space<vmem>>, %arg4: memref<1x96xf32, #tpu.memory_space<vmem>>, %arg5: memref<4x8x32xf32, #tpu.memory_space<vmem>>, %arg6: memref<4x32xf32, #tpu.memory_space<vmem>>, %arg7: memref<32x64xf32, #tpu.memory_space<vmem>>, %arg8: memref<1x64xf32, #tpu.memory_space<vmem>>, %arg9: memref<64x32xf32, #tpu.memory_space<vmem>>, %arg10: memref<1x8x32xf32, #tpu.memory_space<vmem>>, %arg11: memref<1x8x8xf32, #tpu.memory_space<vmem>>) attributes {dimension_semantics = [#tpu.dimension_semantics<parallel>], iteration_bounds = array<i64: 2>, scalar_prefetch = 0 : i64, scratch_operands = 0 : i64, tpu.core_type = #tpu.core_type<tc>, window_params = [{transform_indices = @transform_0, window_bounds = array<i64: 1, 8, 32>}, {transform_indices = @transform_1, window_bounds = array<i64: 1, 8, 8>}, {pipeline_mode = #tpu.pipeline_mode<synchronous>, transform_indices = @transform_2, window_bounds = array<i64: 32, 96>}, {pipeline_mode = #tpu.pipeline_mode<synchronous>, transform_indices = @transform_3, window_bounds = array<i64: 1, 96>}, {pipeline_mode = #tpu.pipeline_mode<synchronous>, transform_indices = @transform_4, window_bounds = array<i64: 4, 8, 32>}, {pipeline_mode = #tpu.pipeline_mode<synchronous>, transform_indices = @transform_5, window_bounds = array<i64: 4, 32>}, {pipeline_mode = #tpu.pipeline_mode<synchronous>, transform_indices = @transform_6, window_bounds = array<i64: 32, 64>}, {pipeline_mode = #tpu.pipeline_mode<synchronous>, transform_indices = @transform_7, window_bounds = array<i64: 1, 64>}, {pipeline_mode = #tpu.pipeline_mode<synchronous>, transform_indices = @transform_8, window_bounds = array<i64: 64, 32>}, {transform_indices = @transform_9, window_bounds = array<i64: 1, 8, 32>}, {transform_indices = @transform_10, window_bounds = array<i64: 1, 8, 8>}]} {
    %c0 = arith.constant 0 : index
    %c0_0 = arith.constant 0 : index
    %c0_1 = arith.constant 0 : index
    %0 = vector.load %arg1[%c0, %c0_0, %c0_1] : memref<1x8x32xf32, #tpu.memory_space<vmem>>, vector<1x8x32xf32>
    %1 = vector.shape_cast %0 : vector<1x8x32xf32> to vector<8x32xf32>
    %c0_2 = arith.constant 0 : index
    %c0_3 = arith.constant 0 : index
    %c0_4 = arith.constant 0 : index
    %2 = vector.load %arg2[%c0_2, %c0_3, %c0_4] : memref<1x8x8xf32, #tpu.memory_space<vmem>>, vector<1x8x8xf32>
    %3 = vector.shape_cast %2 : vector<1x8x8xf32> to vector<8x8xf32>
    %cst = arith.constant 0.000000e+00 : f32
    %4 = vector.broadcast %cst : f32 to vector<8x8xf32>
    %5 = arith.cmpf ogt, %3, %4 : vector<8x8xf32>
    %c0_5 = arith.constant 0 : index
    %c0_6 = arith.constant 0 : index
    %6 = vector.load %arg6[%c0_5, %c0_6] : memref<4x32xf32, #tpu.memory_space<vmem>>, vector<4x32xf32>
    %7 = vector.extract_strided_slice %6 {offsets = [0, 0], sizes = [1, 32], strides = [1, 1]} : vector<4x32xf32> to vector<1x32xf32>
    %8 = vector.shape_cast %7 : vector<1x32xf32> to vector<1x32xf32>
    %9 = vector.broadcast %8 : vector<1x32xf32> to vector<8x32xf32>
    %10 = vector.extract_strided_slice %6 {offsets = [1, 0], sizes = [1, 32], strides = [1, 1]} : vector<4x32xf32> to vector<1x32xf32>
    %11 = vector.shape_cast %10 : vector<1x32xf32> to vector<1x32xf32>
    %12 = vector.broadcast %11 : vector<1x32xf32> to vector<8x32xf32>
    %13 = vector.extract_strided_slice %6 {offsets = [2, 0], sizes = [1, 32], strides = [1, 1]} : vector<4x32xf32> to vector<1x32xf32>
    %14 = vector.shape_cast %13 : vector<1x32xf32> to vector<1x32xf32>
    %15 = vector.broadcast %14 : vector<1x32xf32> to vector<8x32xf32>
    %16 = vector.extract_strided_slice %6 {offsets = [3, 0], sizes = [1, 32], strides = [1, 1]} : vector<4x32xf32> to vector<1x32xf32>
    %cst_7 = arith.constant dense<0.000000e+00> : vector<8xf32>
    %17 = vector.multi_reduction <add>, %1, %cst_7 [1] : vector<8x32xf32> to vector<8xf32>
    %18 = vector.shape_cast %17 : vector<8xf32> to vector<8x1xf32>
    %cst_8 = arith.constant 3.200000e+01 : f32
    %19 = vector.broadcast %cst_8 : f32 to vector<8x1xf32>
    %20 = arith.divf %18, %19 : vector<8x1xf32>
    %21 = vector.broadcast %20 : vector<8x1xf32> to vector<8x32xf32>
    %22 = arith.subf %1, %21 : vector<8x32xf32>
    %23 = arith.mulf %22, %22 : vector<8x32xf32>
    %cst_9 = arith.constant dense<0.000000e+00> : vector<8xf32>
    %24 = vector.multi_reduction <add>, %23, %cst_9 [1] : vector<8x32xf32> to vector<8xf32>
    %25 = vector.shape_cast %24 : vector<8xf32> to vector<8x1xf32>
    %cst_10 = arith.constant 3.200000e+01 : f32
    %26 = vector.broadcast %cst_10 : f32 to vector<8x1xf32>
    %27 = arith.divf %25, %26 : vector<8x1xf32>
    %28 = vector.broadcast %20 : vector<8x1xf32> to vector<8x32xf32>
    %29 = arith.subf %1, %28 : vector<8x32xf32>
    %cst_11 = arith.constant 9.99999974E-6 : f32
    %30 = vector.broadcast %cst_11 : f32 to vector<8x1xf32>
    %31 = arith.addf %27, %30 : vector<8x1xf32>
    %32 = math.rsqrt %31 : vector<8x1xf32>
    %33 = vector.broadcast %32 : vector<8x1xf32> to vector<8x32xf32>
    %34 = arith.mulf %29, %33 : vector<8x32xf32>
    %35 = arith.mulf %34, %9 : vector<8x32xf32>
    %36 = arith.addf %35, %12 : vector<8x32xf32>
    %c0_12 = arith.constant 0 : index
    %c0_13 = arith.constant 0 : index
    %37 = vector.load %arg3[%c0_12, %c0_13] : memref<32x96xf32, #tpu.memory_space<vmem>>, vector<32x96xf32>
    %cst_14 = arith.constant dense<0.000000e+00> : vector<8x96xf32>
    %38 = tpu.matmul %36, %37, %cst_14 {dimension_numbers = #tpu.dot_dimension_numbers<[1], [0], [0], [1], [0, 0, 1, 1], [], []>} : vector<8x32xf32>, vector<32x96xf32>, vector<8x96xf32> -> vector<8x96xf32>
    %c0_15 = arith.constant 0 : index
    %c0_16 = arith.constant 0 : index
    %39 = vector.load %arg4[%c0_15, %c0_16] : memref<1x96xf32, #tpu.memory_space<vmem>>, vector<1x96xf32>
    %40 = vector.broadcast %39 : vector<1x96xf32> to vector<8x96xf32>
    %41 = arith.addf %38, %40 : vector<8x96xf32>
    %cst_17 = arith.constant 0.000000e+00 : f32
    %42 = vector.broadcast %cst_17 : f32 to vector<8x8xf32>
    %43 = vector.extract_strided_slice %41 {offsets = [0, 0], sizes = [8, 8], strides = [1, 1]} : vector<8x96xf32> to vector<8x8xf32>
    %44 = vector.extract_strided_slice %41 {offsets = [0, 32], sizes = [8, 8], strides = [1, 1]} : vector<8x96xf32> to vector<8x8xf32>
    %45 = vector.extract_strided_slice %41 {offsets = [0, 64], sizes = [8, 8], strides = [1, 1]} : vector<8x96xf32> to vector<8x8xf32>
    "tpu.trace_start"() <{level = 10 : i32, message = "qd,kd->qk"}> : () -> ()
    %cst_18 = arith.constant dense<0.000000e+00> : vector<8x8xf32>
    %46 = tpu.matmul %43, %44, %cst_18 {dimension_numbers = #tpu.dot_dimension_numbers<[1], [1], [0], [0], [0, 0, 1, 0], [], []>} : vector<8x8xf32>, vector<8x8xf32>, vector<8x8xf32> -> vector<8x8xf32>
    "tpu.trace_stop"() : () -> ()
    %cst_19 = arith.constant 0.353553385 : f32
    %47 = vector.broadcast %cst_19 : f32 to vector<8x8xf32>
    %48 = arith.mulf %46, %47 : vector<8x8xf32>
    %cst_20 = arith.constant -1.000000e+09 : f32
    %49 = vector.broadcast %cst_20 : f32 to vector<8x8xf32>
    %50 = arith.select %5, %49, %48 : vector<8x8xi1>, vector<8x8xf32>
    %cst_21 = arith.constant dense<0xFF800000> : vector<8xf32>
    %51 = vector.multi_reduction <maximumf>, %50, %cst_21 [1] : vector<8x8xf32> to vector<8xf32>
    %52 = vector.shape_cast %51 : vector<8xf32> to vector<8x1xf32>
    %53 = vector.broadcast %52 : vector<8x1xf32> to vector<8x8xf32>
    %54 = arith.subf %50, %53 : vector<8x8xf32>
    %55 = math.exp %54 : vector<8x8xf32>
    %cst_22 = arith.constant dense<0.000000e+00> : vector<8xf32>
    %56 = vector.multi_reduction <add>, %55, %cst_22 [1] : vector<8x8xf32> to vector<8xf32>
    %57 = vector.shape_cast %56 : vector<8xf32> to vector<8x1xf32>
    %58 = tpu.reciprocal %57 {approx = true} : vector<8x1xf32> -> vector<8x1xf32>
    %59 = vector.broadcast %58 : vector<8x1xf32> to vector<8x8xf32>
    %60 = arith.mulf %55, %59 : vector<8x8xf32>
    %61 = arith.addf %42, %60 : vector<8x8xf32>
    %cst_23 = arith.constant dense<0.000000e+00> : vector<8x8xf32>
    %62 = tpu.matmul %60, %45, %cst_23 {dimension_numbers = #tpu.dot_dimension_numbers<[1], [0], [0], [1], [0, 0, 1, 1], [], []>} : vector<8x8xf32>, vector<8x8xf32>, vector<8x8xf32> -> vector<8x8xf32>
    %c0_24 = arith.constant 0 : index
    %c0_25 = arith.constant 0 : index
    %c0_26 = arith.constant 0 : index
    %63 = vector.load %arg5[%c0_24, %c0_25, %c0_26] : memref<4x8x32xf32, #tpu.memory_space<vmem>>, vector<1x8x32xf32>
    %64 = vector.shape_cast %63 : vector<1x8x32xf32> to vector<8x32xf32>
    %cst_27 = arith.constant dense<0.000000e+00> : vector<8x32xf32>
    %65 = tpu.matmul %62, %64, %cst_27 {dimension_numbers = #tpu.dot_dimension_numbers<[1], [0], [0], [1], [0, 0, 1, 1], [], []>} : vector<8x8xf32>, vector<8x32xf32>, vector<8x32xf32> -> vector<8x32xf32>
    %66 = arith.addf %15, %65 : vector<8x32xf32>
    %67 = vector.extract_strided_slice %41 {offsets = [0, 8], sizes = [8, 8], strides = [1, 1]} : vector<8x96xf32> to vector<8x8xf32>
    %68 = vector.extract_strided_slice %41 {offsets = [0, 40], sizes = [8, 8], strides = [1, 1]} : vector<8x96xf32> to vector<8x8xf32>
    %69 = vector.extract_strided_slice %41 {offsets = [0, 72], sizes = [8, 8], strides = [1, 1]} : vector<8x96xf32> to vector<8x8xf32>
    "tpu.trace_start"() <{level = 10 : i32, message = "qd,kd->qk"}> : () -> ()
    %cst_28 = arith.constant dense<0.000000e+00> : vector<8x8xf32>
    %70 = tpu.matmul %67, %68, %cst_28 {dimension_numbers = #tpu.dot_dimension_numbers<[1], [1], [0], [0], [0, 0, 1, 0], [], []>} : vector<8x8xf32>, vector<8x8xf32>, vector<8x8xf32> -> vector<8x8xf32>
    "tpu.trace_stop"() : () -> ()
    %cst_29 = arith.constant 0.353553385 : f32
    %71 = vector.broadcast %cst_29 : f32 to vector<8x8xf32>
    %72 = arith.mulf %70, %71 : vector<8x8xf32>
    %cst_30 = arith.constant -1.000000e+09 : f32
    %73 = vector.broadcast %cst_30 : f32 to vector<8x8xf32>
    %74 = arith.select %5, %73, %72 : vector<8x8xi1>, vector<8x8xf32>
    %cst_31 = arith.constant dense<0xFF800000> : vector<8xf32>
    %75 = vector.multi_reduction <maximumf>, %74, %cst_31 [1] : vector<8x8xf32> to vector<8xf32>
    %76 = vector.shape_cast %75 : vector<8xf32> to vector<8x1xf32>
    %77 = vector.broadcast %76 : vector<8x1xf32> to vector<8x8xf32>
    %78 = arith.subf %74, %77 : vector<8x8xf32>
    %79 = math.exp %78 : vector<8x8xf32>
    %cst_32 = arith.constant dense<0.000000e+00> : vector<8xf32>
    %80 = vector.multi_reduction <add>, %79, %cst_32 [1] : vector<8x8xf32> to vector<8xf32>
    %81 = vector.shape_cast %80 : vector<8xf32> to vector<8x1xf32>
    %82 = tpu.reciprocal %81 {approx = true} : vector<8x1xf32> -> vector<8x1xf32>
    %83 = vector.broadcast %82 : vector<8x1xf32> to vector<8x8xf32>
    %84 = arith.mulf %79, %83 : vector<8x8xf32>
    %85 = arith.addf %61, %84 : vector<8x8xf32>
    %cst_33 = arith.constant dense<0.000000e+00> : vector<8x8xf32>
    %86 = tpu.matmul %84, %69, %cst_33 {dimension_numbers = #tpu.dot_dimension_numbers<[1], [0], [0], [1], [0, 0, 1, 1], [], []>} : vector<8x8xf32>, vector<8x8xf32>, vector<8x8xf32> -> vector<8x8xf32>
    %c1 = arith.constant 1 : index
    %c0_34 = arith.constant 0 : index
    %c0_35 = arith.constant 0 : index
    %87 = vector.load %arg5[%c1, %c0_34, %c0_35] : memref<4x8x32xf32, #tpu.memory_space<vmem>>, vector<1x8x32xf32>
    %88 = vector.shape_cast %87 : vector<1x8x32xf32> to vector<8x32xf32>
    %cst_36 = arith.constant dense<0.000000e+00> : vector<8x32xf32>
    %89 = tpu.matmul %86, %88, %cst_36 {dimension_numbers = #tpu.dot_dimension_numbers<[1], [0], [0], [1], [0, 0, 1, 1], [], []>} : vector<8x8xf32>, vector<8x32xf32>, vector<8x32xf32> -> vector<8x32xf32>
    %90 = arith.addf %66, %89 : vector<8x32xf32>
    %91 = vector.extract_strided_slice %41 {offsets = [0, 16], sizes = [8, 8], strides = [1, 1]} : vector<8x96xf32> to vector<8x8xf32>
    %92 = vector.extract_strided_slice %41 {offsets = [0, 48], sizes = [8, 8], strides = [1, 1]} : vector<8x96xf32> to vector<8x8xf32>
    %93 = vector.extract_strided_slice %41 {offsets = [0, 80], sizes = [8, 8], strides = [1, 1]} : vector<8x96xf32> to vector<8x8xf32>
    "tpu.trace_start"() <{level = 10 : i32, message = "qd,kd->qk"}> : () -> ()
    %cst_37 = arith.constant dense<0.000000e+00> : vector<8x8xf32>
    %94 = tpu.matmul %91, %92, %cst_37 {dimension_numbers = #tpu.dot_dimension_numbers<[1], [1], [0], [0], [0, 0, 1, 0], [], []>} : vector<8x8xf32>, vector<8x8xf32>, vector<8x8xf32> -> vector<8x8xf32>
    "tpu.trace_stop"() : () -> ()
    %cst_38 = arith.constant 0.353553385 : f32
    %95 = vector.broadcast %cst_38 : f32 to vector<8x8xf32>
    %96 = arith.mulf %94, %95 : vector<8x8xf32>
    %cst_39 = arith.constant -1.000000e+09 : f32
    %97 = vector.broadcast %cst_39 : f32 to vector<8x8xf32>
    %98 = arith.select %5, %97, %96 : vector<8x8xi1>, vector<8x8xf32>
    %cst_40 = arith.constant dense<0xFF800000> : vector<8xf32>
    %99 = vector.multi_reduction <maximumf>, %98, %cst_40 [1] : vector<8x8xf32> to vector<8xf32>
    %100 = vector.shape_cast %99 : vector<8xf32> to vector<8x1xf32>
    %101 = vector.broadcast %100 : vector<8x1xf32> to vector<8x8xf32>
    %102 = arith.subf %98, %101 : vector<8x8xf32>
    %103 = math.exp %102 : vector<8x8xf32>
    %cst_41 = arith.constant dense<0.000000e+00> : vector<8xf32>
    %104 = vector.multi_reduction <add>, %103, %cst_41 [1] : vector<8x8xf32> to vector<8xf32>
    %105 = vector.shape_cast %104 : vector<8xf32> to vector<8x1xf32>
    %106 = tpu.reciprocal %105 {approx = true} : vector<8x1xf32> -> vector<8x1xf32>
    %107 = vector.broadcast %106 : vector<8x1xf32> to vector<8x8xf32>
    %108 = arith.mulf %103, %107 : vector<8x8xf32>
    %109 = arith.addf %85, %108 : vector<8x8xf32>
    %cst_42 = arith.constant dense<0.000000e+00> : vector<8x8xf32>
    %110 = tpu.matmul %108, %93, %cst_42 {dimension_numbers = #tpu.dot_dimension_numbers<[1], [0], [0], [1], [0, 0, 1, 1], [], []>} : vector<8x8xf32>, vector<8x8xf32>, vector<8x8xf32> -> vector<8x8xf32>
    %c2 = arith.constant 2 : index
    %c0_43 = arith.constant 0 : index
    %c0_44 = arith.constant 0 : index
    %111 = vector.load %arg5[%c2, %c0_43, %c0_44] : memref<4x8x32xf32, #tpu.memory_space<vmem>>, vector<1x8x32xf32>
    %112 = vector.shape_cast %111 : vector<1x8x32xf32> to vector<8x32xf32>
    %cst_45 = arith.constant dense<0.000000e+00> : vector<8x32xf32>
    %113 = tpu.matmul %110, %112, %cst_45 {dimension_numbers = #tpu.dot_dimension_numbers<[1], [0], [0], [1], [0, 0, 1, 1], [], []>} : vector<8x8xf32>, vector<8x32xf32>, vector<8x32xf32> -> vector<8x32xf32>
    %114 = arith.addf %90, %113 : vector<8x32xf32>
    %115 = vector.extract_strided_slice %41 {offsets = [0, 24], sizes = [8, 8], strides = [1, 1]} : vector<8x96xf32> to vector<8x8xf32>
    %116 = vector.extract_strided_slice %41 {offsets = [0, 56], sizes = [8, 8], strides = [1, 1]} : vector<8x96xf32> to vector<8x8xf32>
    %117 = vector.extract_strided_slice %41 {offsets = [0, 88], sizes = [8, 8], strides = [1, 1]} : vector<8x96xf32> to vector<8x8xf32>
    "tpu.trace_start"() <{level = 10 : i32, message = "qd,kd->qk"}> : () -> ()
    %cst_46 = arith.constant dense<0.000000e+00> : vector<8x8xf32>
    %118 = tpu.matmul %115, %116, %cst_46 {dimension_numbers = #tpu.dot_dimension_numbers<[1], [1], [0], [0], [0, 0, 1, 0], [], []>} : vector<8x8xf32>, vector<8x8xf32>, vector<8x8xf32> -> vector<8x8xf32>
    "tpu.trace_stop"() : () -> ()
    %cst_47 = arith.constant 0.353553385 : f32
    %119 = vector.broadcast %cst_47 : f32 to vector<8x8xf32>
    %120 = arith.mulf %118, %119 : vector<8x8xf32>
    %cst_48 = arith.constant -1.000000e+09 : f32
    %121 = vector.broadcast %cst_48 : f32 to vector<8x8xf32>
    %122 = arith.select %5, %121, %120 : vector<8x8xi1>, vector<8x8xf32>
    %cst_49 = arith.constant dense<0xFF800000> : vector<8xf32>
    %123 = vector.multi_reduction <maximumf>, %122, %cst_49 [1] : vector<8x8xf32> to vector<8xf32>
    %124 = vector.shape_cast %123 : vector<8xf32> to vector<8x1xf32>
    %125 = vector.broadcast %124 : vector<8x1xf32> to vector<8x8xf32>
    %126 = arith.subf %122, %125 : vector<8x8xf32>
    %127 = math.exp %126 : vector<8x8xf32>
    %cst_50 = arith.constant dense<0.000000e+00> : vector<8xf32>
    %128 = vector.multi_reduction <add>, %127, %cst_50 [1] : vector<8x8xf32> to vector<8xf32>
    %129 = vector.shape_cast %128 : vector<8xf32> to vector<8x1xf32>
    %130 = tpu.reciprocal %129 {approx = true} : vector<8x1xf32> -> vector<8x1xf32>
    %131 = vector.broadcast %130 : vector<8x1xf32> to vector<8x8xf32>
    %132 = arith.mulf %127, %131 : vector<8x8xf32>
    %133 = arith.addf %109, %132 : vector<8x8xf32>
    %cst_51 = arith.constant dense<0.000000e+00> : vector<8x8xf32>
    %134 = tpu.matmul %132, %117, %cst_51 {dimension_numbers = #tpu.dot_dimension_numbers<[1], [0], [0], [1], [0, 0, 1, 1], [], []>} : vector<8x8xf32>, vector<8x8xf32>, vector<8x8xf32> -> vector<8x8xf32>
    %c3 = arith.constant 3 : index
    %c0_52 = arith.constant 0 : index
    %c0_53 = arith.constant 0 : index
    %135 = vector.load %arg5[%c3, %c0_52, %c0_53] : memref<4x8x32xf32, #tpu.memory_space<vmem>>, vector<1x8x32xf32>
    %136 = vector.shape_cast %135 : vector<1x8x32xf32> to vector<8x32xf32>
    %cst_54 = arith.constant dense<0.000000e+00> : vector<8x32xf32>
    %137 = tpu.matmul %134, %136, %cst_54 {dimension_numbers = #tpu.dot_dimension_numbers<[1], [0], [0], [1], [0, 0, 1, 1], [], []>} : vector<8x8xf32>, vector<8x32xf32>, vector<8x32xf32> -> vector<8x32xf32>
    %138 = arith.addf %114, %137 : vector<8x32xf32>
    %139 = arith.addf %138, %36 : vector<8x32xf32>
    %cst_55 = arith.constant dense<0.000000e+00> : vector<8xf32>
    %140 = vector.multi_reduction <add>, %139, %cst_55 [1] : vector<8x32xf32> to vector<8xf32>
    %141 = vector.shape_cast %140 : vector<8xf32> to vector<8x1xf32>
    %cst_56 = arith.constant 3.200000e+01 : f32
    %142 = vector.broadcast %cst_56 : f32 to vector<8x1xf32>
    %143 = arith.divf %141, %142 : vector<8x1xf32>
    %144 = vector.broadcast %143 : vector<8x1xf32> to vector<8x32xf32>
    %145 = arith.subf %139, %144 : vector<8x32xf32>
    %146 = arith.mulf %145, %145 : vector<8x32xf32>
    %cst_57 = arith.constant dense<0.000000e+00> : vector<8xf32>
    %147 = vector.multi_reduction <add>, %146, %cst_57 [1] : vector<8x32xf32> to vector<8xf32>
    %148 = vector.shape_cast %147 : vector<8xf32> to vector<8x1xf32>
    %cst_58 = arith.constant 3.200000e+01 : f32
    %149 = vector.broadcast %cst_58 : f32 to vector<8x1xf32>
    %150 = arith.divf %148, %149 : vector<8x1xf32>
    %151 = vector.broadcast %143 : vector<8x1xf32> to vector<8x32xf32>
    %152 = arith.subf %139, %151 : vector<8x32xf32>
    %cst_59 = arith.constant 9.99999974E-6 : f32
    %153 = vector.broadcast %cst_59 : f32 to vector<8x1xf32>
    %154 = arith.addf %150, %153 : vector<8x1xf32>
    %155 = math.rsqrt %154 : vector<8x1xf32>
    %156 = vector.broadcast %155 : vector<8x1xf32> to vector<8x32xf32>
    %157 = arith.mulf %152, %156 : vector<8x32xf32>
    %158 = arith.mulf %157, %9 : vector<8x32xf32>
    %159 = arith.addf %158, %12 : vector<8x32xf32>
    %c0_60 = arith.constant 0 : index
    %c0_61 = arith.constant 0 : index
    %160 = vector.load %arg7[%c0_60, %c0_61] : memref<32x64xf32, #tpu.memory_space<vmem>>, vector<32x64xf32>
    %cst_62 = arith.constant dense<0.000000e+00> : vector<8x64xf32>
    %161 = tpu.matmul %159, %160, %cst_62 {dimension_numbers = #tpu.dot_dimension_numbers<[1], [0], [0], [1], [0, 0, 1, 1], [], []>} : vector<8x32xf32>, vector<32x64xf32>, vector<8x64xf32> -> vector<8x64xf32>
    %c0_63 = arith.constant 0 : index
    %c0_64 = arith.constant 0 : index
    %162 = vector.load %arg8[%c0_63, %c0_64] : memref<1x64xf32, #tpu.memory_space<vmem>>, vector<1x64xf32>
    %163 = vector.broadcast %162 : vector<1x64xf32> to vector<8x64xf32>
    %164 = arith.addf %161, %163 : vector<8x64xf32>
    %cst_65 = arith.constant 0.000000e+00 : f32
    %165 = vector.broadcast %cst_65 : f32 to vector<8x64xf32>
    %166 = arith.maximumf %164, %165 : vector<8x64xf32>
    %c0_66 = arith.constant 0 : index
    %c0_67 = arith.constant 0 : index
    %167 = vector.load %arg9[%c0_66, %c0_67] : memref<64x32xf32, #tpu.memory_space<vmem>>, vector<64x32xf32>
    %cst_68 = arith.constant dense<0.000000e+00> : vector<8x32xf32>
    %168 = tpu.matmul %166, %167, %cst_68 {dimension_numbers = #tpu.dot_dimension_numbers<[1], [0], [0], [1], [0, 0, 1, 1], [], []>} : vector<8x64xf32>, vector<64x32xf32>, vector<8x32xf32> -> vector<8x32xf32>
    %169 = vector.broadcast %16 : vector<1x32xf32> to vector<8x32xf32>
    %170 = arith.addf %168, %169 : vector<8x32xf32>
    %171 = arith.addf %170, %159 : vector<8x32xf32>
    %c0_69 = arith.constant 0 : index
    %c0_70 = arith.constant 0 : index
    %c0_71 = arith.constant 0 : index
    %172 = vector.load %arg10[%c0_69, %c0_70, %c0_71] : memref<1x8x32xf32, #tpu.memory_space<vmem>>, vector<1x8x32xf32>
    %173 = vector.shape_cast %172 : vector<1x8x32xf32> to vector<8x32xf32>
    %174 = vector.shape_cast %171 : vector<8x32xf32> to vector<1x8x32xf32>
    tpu.vector_store %arg10[%c0_69, %c0_70, %c0_71], %174 {strides = array<i32>} : memref<1x8x32xf32, #tpu.memory_space<vmem>>, vector<1x8x32xf32>,
    %cst_72 = arith.constant 2.500000e-01 : f32
    %175 = vector.broadcast %cst_72 : f32 to vector<8x8xf32>
    %176 = arith.mulf %133, %175 : vector<8x8xf32>
    %c0_73 = arith.constant 0 : index
    %c0_74 = arith.constant 0 : index
    %c0_75 = arith.constant 0 : index
    %177 = vector.load %arg11[%c0_73, %c0_74, %c0_75] : memref<1x8x8xf32, #tpu.memory_space<vmem>>, vector<1x8x8xf32>
    %178 = vector.shape_cast %177 : vector<1x8x8xf32> to vector<8x8xf32>
    %179 = vector.shape_cast %176 : vector<8x8xf32> to vector<1x8x8xf32>
    tpu.vector_store %arg11[%c0_73, %c0_74, %c0_75], %179 {strides = array<i32>} : memref<1x8x8xf32, #tpu.memory_space<vmem>>, vector<1x8x8xf32>,
    return
  }
  func.func @transform_0(%arg0: i32) -> (i32, i32, i32) {
    %c0_i32 = arith.constant 0 : i32
    %c0_i32_0 = arith.constant 0 : i32
    %c0_i32_1 = arith.constant 0 : i32
    return %arg0, %c0_i32, %c0_i32_0 : i32, i32, i32
  }
  func.func @transform_1(%arg0: i32) -> (i32, i32, i32) {
    %c0_i32 = arith.constant 0 : i32
    %c0_i32_0 = arith.constant 0 : i32
    %c0_i32_1 = arith.constant 0 : i32
    return %arg0, %c0_i32, %c0_i32_0 : i32, i32, i32
  }
  func.func @transform_2(%arg0: i32) -> (i32, i32) {
    %c0_i32 = arith.constant 0 : i32
    %c0_i32_0 = arith.constant 0 : i32
    %c0_i32_1 = arith.constant 0 : i32
    return %c0_i32, %c0_i32_0 : i32, i32
  }
  func.func @transform_3(%arg0: i32) -> (i32, i32) {
    %c0_i32 = arith.constant 0 : i32
    %c0_i32_0 = arith.constant 0 : i32
    %c0_i32_1 = arith.constant 0 : i32
    return %c0_i32, %c0_i32_0 : i32, i32
  }
  func.func @transform_4(%arg0: i32) -> (i32, i32, i32) {
    %c0_i32 = arith.constant 0 : i32
    %c0_i32_0 = arith.constant 0 : i32
    %c0_i32_1 = arith.constant 0 : i32
    %c0_i32_2 = arith.constant 0 : i32
    return %c0_i32, %c0_i32_0, %c0_i32_1 : i32, i32, i32
  }
  func.func @transform_5(%arg0: i32) -> (i32, i32) {
    %c0_i32 = arith.constant 0 : i32
    %c0_i32_0 = arith.constant 0 : i32
    %c0_i32_1 = arith.constant 0 : i32
    return %c0_i32, %c0_i32_0 : i32, i32
  }
  func.func @transform_6(%arg0: i32) -> (i32, i32) {
    %c0_i32 = arith.constant 0 : i32
    %c0_i32_0 = arith.constant 0 : i32
    %c0_i32_1 = arith.constant 0 : i32
    return %c0_i32, %c0_i32_0 : i32, i32
  }
  func.func @transform_7(%arg0: i32) -> (i32, i32) {
    %c0_i32 = arith.constant 0 : i32
    %c0_i32_0 = arith.constant 0 : i32
    %c0_i32_1 = arith.constant 0 : i32
    return %c0_i32, %c0_i32_0 : i32, i32
  }
  func.func @transform_8(%arg0: i32) -> (i32, i32) {
    %c0_i32 = arith.constant 0 : i32
    %c0_i32_0 = arith.constant 0 : i32
    %c0_i32_1 = arith.constant 0 : i32
    return %c0_i32, %c0_i32_0 : i32, i32
  }
  func.func @transform_9(%arg0: i32) -> (i32, i32, i32) {
    %c0_i32 = arith.constant 0 : i32
    %c0_i32_0 = arith.constant 0 : i32
    %c0_i32_1 = arith.constant 0 : i32
    return %arg0, %c0_i32, %c0_i32_0 : i32, i32, i32
  }
  func.func @transform_10(%arg0: i32) -> (i32, i32, i32) {
    %c0_i32 = arith.constant 0 : i32
    %c0_i32_0 = arith.constant 0 : i32
    %c0_i32_1 = arith.constant 0 : i32
    return %arg0, %c0_i32, %c0_i32_0 : i32, i32, i32
  }
}

</mosaic_0001>

<bundles_post_ra>
// kernel: encoder_layer.1
= control target key start
LH: loop header
LB: loop body
LE: loop exit
PB: predicated region body
PF: predicated region fallthrough
CT: control target
= control target key end

     0   :  { %s2852_s0 = inlined_call_operand.hbm [shape: f32[2,8,32], index: 0, kind: input, shape index: {}]   ;;  %s2853_s1 = inlined_call_operand.hbm [shape: f32[2,8,8], index: 1, kind: input, shape index: {}]   ;;  %s2854_s2 = inlined_call_operand.vmem [shape: f32[32,96], index: 2, kind: input, shape index: {}]   ;;  %s2855_s3 = inlined_call_operand.vmem [shape: f32[1,96], index: 3, kind: input, shape index: {}]   ;;  %s2856_s4 = inlined_call_operand.vmem [shape: f32[4,8,32], index: 4, kind: input, shape index: {}]   ;;  %s2857_s5 = inlined_call_operand.vmem [shape: f32[4,32], index: 5, kind: input, shape index: {}]   ;;  %s2858_s6 = inlined_call_operand.vmem [shape: f32[32,64], index: 6, kind: input, shape index: {}]   ;;  %s2859_s7 = inlined_call_operand.vmem [shape: f32[1,64], index: 7, kind: input, shape index: {}]   ;;  %s2860_s8 = inlined_call_operand.vmem [shape: f32[64,32], index: 8, kind: input, shape index: {}]   ;;  %s2861_s9 = inlined_call_operand.hbm [shape: f32[2,8,32], index: 9, kind: output, shape index: {0}]   ;;  %s2862_s10 = inlined_call_operand.hbm [shape: f32[2,8,8], index: 10, kind: output, shape index: {1}]  }
   0x1   :  { %2870 = sst [smem:[#allocation17_spill]] %s2852_s0 }
   0x2   :  { %16 = vsyncpa [#allocation3], 0 }
   0x3   :  { %18 = vsyncpa [#allocation3 + $0x1], 0 }
   0x4   :  { %19 = vsyncpa [#allocation6], 0 }
   0x5   :  { %21 = vsyncpa [#allocation6 + $0x1], 0 }
   0x6   :  { %22 = vsyncpa [#allocation4], 0 }
   0x7   :  { %24 = vsyncpa [#allocation4 + $0x1], 0 }
   0x8   :  { %25 = vsyncpa [#allocation9], 0 }
   0x9   :  { %27 = vsyncpa [#allocation9 + $0x1], 0  ;;  %s2400_s13 = smov 0   ;;  %s2402_s14 = smov 0  }
   0xa   :  { %s2404_s15 = smov 0   ;;  %s2406_s16 = smov 0  }
   0xb LB: > { %2871 = sst [smem:[#allocation14_spill]] %s2321_s15  ;;  %s2421_s17 = sadd.s32 4294967295, %s2325_s16   ;;  %s2325_s16 = sphi %s2406_s16, %s2890_s16   ;;  %s2321_s15 = sphi %s2404_s15, %s2892_s15   ;;  %s2317_s14 = sphi %s2402_s14, %s2894_s14   ;;  %s2313_s13 = sphi %s2400_s13, %s2893_s13  }
   0xc   : > { %s1863_s18 = sadd.s32 4294967294, %s2325_s16   ;;  %s2425_s19 = sadd.s32 1, %s2325_s16  }
   0xd   : > { %2872 = sst [smem:[#allocation15_spill]] %s2425_s19  ;;  %s40_s20 = sadd.s32 1, %s2321_s15 }
   0xe   : > { %s37_s21 = ssub.s32 %s2325_s16, %s2425_s19  ;;  %p47_p0 = scmp.ne.s32.totalorder %s2321_s15, %s2317_s14 }
   0xf   : > { %p38_p1 = scmp.eq.s32.totalorder %s37_s21, 0  ;;  %p48_p2 = scmp.eq.s32.totalorder %s2325_s16, 0 }
  0x10   : > { %p53_p3 = scmp.ne.s32.totalorder %s2317_s14, %s2313_s13  ;;  %p54_p4 = scmp.eq.s32.totalorder %s2421_s17, 0 }
  0x11   : > { %s2437_s22 = scalar_select %p38_p1, %s2321_s15, %s40_s20  }
  0x12   : > { %p2439_p5 = por %p48_p2, %p47_p0  ;;  %p2443_p6 = por %p54_p4, %p53_p3 }
  0x13   : > { %2873 = sst [smem:[#allocation16_spill]] %s2437_s22  ;;  %p250_p7 = scmp.eq.s32.totalorder %s2421_s17, 1 }
  0x14   : > { %s2875_s24 = scalar_select %p2443_p6, 1, 0 }
  0x15   : > { %p256_p8 = scmp.eq.s32.totalorder %s1863_s18, 1  ;;  %p2095_p10 = scmp.lt.s32.totalorder %s2325_s16, 2 }
  0x16   : > { %p2450_p11 = por %p250_p7, %p47_p0  ;;  %s2459_s27 = sand.u32 1, %s2321_s15  }
  0x17   : > { %p2454_p12 = por %p256_p8, %p53_p3  ;;  %s2864_s28 = sshll.u32 %s2325_s16, 7 }
  0x18   : > { %s2876_s25 = scalar_select %p2450_p11, 1, 0 }
  0x19   : > { %s2877_s26 = scalar_select %p2454_p12, 1, 0 }
  0x1a   : > { %s2863_s29 = sshll.u32 %s2459_s27, 3  ;;  %s2878_s0 = sld [smem:[#allocation17_spill]] }
  0x1b   : > { %s327_s18 = scalar_lea.vmem [#allocation2], %s2863_s29  ;;  %p2474_p13 = pnand %p2095_p10, %p2439_p5 }
  0x1c   : > { %s334_s20 = sshll.u32 %s327_s18, 4  ;;  %s324_s30 = scalar_lea.sflag [#allocation3], %s2459_s27  ;;  %s2478_s20 = int_to_ptr.vmem [resolvable:$true] %s334_s20 }
  0x1d   : > { %p2165_p3 = pneg %p2474_p13 }
  0x20   : > { %s2468_s12 = scalar_lea.hbm %s2878_s0, %s2864_s28  ;;  %s2168_s29 = scalar_lea.hbm %s2878_s0, 256 }
  0x21   : > { %s2163_s11 = scalar_lea.hbm %s2468_s12, 128  ;;  %p2169_p5 = scmp.lt.u32.totalorder %s2468_s12, %s2878_s0 }
  0x22   : > { %p2164_p2 = scmp.ne.s32.totalorder %s2468_s12, %s2163_s11  ;;  %p2170_p8 = scmp.lt.u32.totalorder %s2168_s29, %s2163_s11 }
  0x23   : > { %p2172_p9 = scmp.lt.u32.totalorder %s2163_s11, %s2468_s12 }
  0x24   : > { %p2166_p4 = pnand %p2165_p3, %p2164_p2  ;;  %p2171_p10 = por %p2170_p8, %p2169_p5 }
  0x26   : > { %p2167_p7 = pneg %p2166_p4  ;;  %p2173_p0 = por %p2172_p9, %p2171_p10 }
  0x28   : > { %p2174_p1 = pnand %p2173_p0, %p2167_p7 }
  0x2a   : > { %2177 = shalt.err (!%p2174_p1)
}
  0x2b   : > { %s2178_s15 = scalar_lea.vmem %s2478_s20, 128  ;;  %s2327_s23 = smov [#allocation2]  }
  0x2c   : > { %p2179_p2 = scmp.ne.s32.totalorder %s2478_s20, %s2178_s15  ;;  %s2183_s18 = sshll.u32 %s2327_s23, 4  ;;  %s2184_s18 = int_to_ptr.vmem [resolvable:$false] %s2183_s18 }
  0x2d   : > { %s2185_s22 = scalar_lea.vmem %s2184_s18, 256  ;;  %p2186_p11 = scmp.lt.s32.totalorder %s2478_s20, %s2184_s18 }
  0x2e   : > { %p2181_p4 = pnand %p2179_p2, %p2165_p3  ;;  %p2187_p5 = scmp.lt.s32.totalorder %s2185_s22, %s2178_s15 }
  0x30   : > { %p2182_p12 = pneg %p2181_p4  ;;  %p2188_p8 = por %p2187_p5, %p2186_p11 }
  0x32   : > { %p2189_p9 = pnand %p2188_p8, %p2182_p12 }
  0x34   : > { %2192 = shalt.err (!%p2189_p9)
}
  0x35   : > { %2084 = dma.hbm_to_vmem [thread:$0]  (!%p2474_p13), %s2468_s12, 128, %s2478_s20, %s324_s30  }
  0x36   : > { %p2880_p0 = scmp.lt.s32.totalorder %s2325_s16, 3  ;;  %p2881_p1 = scmp.ge.s32.totalorder %s2325_s16, 1 }
  0x37   : > { %s2883_s15 = sshll.u32 %s2325_s16, 7  ;;  %s2884_s18 = sshll.u32 %s2459_s27, 3 }
  0x38   : > { %p2512_p7 = pnand %p2881_p1, %p2880_p0  ;;  %s2521_s23 = scalar_lea.hbm %s2853_s1, %s2883_s15 }
  0x39   : > { %s345_s22 = scalar_lea.vmem [#allocation5], %s2884_s18  ;;  %s342_s12 = scalar_lea.sflag [#allocation6], %s2459_s27 }
  0x3a   : > { %s2882_s28 = scalar_select %p2512_p7, 1, 0 }
  0x3b   : > { %s352_s0 = sshll.u32 %s345_s22, 4  ;;  %s2193_s20 = scalar_lea.hbm %s2521_s23, 128  ;;  %s353_s0 = int_to_ptr.vmem [resolvable:$true] %s352_s0 }
  0x3c   : > { %p2194_p11 = scmp.ne.s32.totalorder %s2521_s23, %s2193_s20  ;;  %s2198_s15 = scalar_lea.hbm %s2853_s1, 256 }
  0x3d   : > { %p2199_p2 = scmp.lt.u32.totalorder %s2521_s23, %s2853_s1  ;;  %p2200_p4 = scmp.lt.u32.totalorder %s2198_s15, %s2193_s20 }
  0x3e   : > { %p2196_p12 = pnand %p2194_p11, %p2165_p3  ;;  %p2202_p8 = scmp.lt.u32.totalorder %s2193_s20, %s2521_s23 }
  0x3f   : > { %p2201_p5 = por %p2200_p4, %p2199_p2 }
  0x40   : > { %p2197_p10 = pneg %p2196_p12 }
  0x41   : > { %p2203_p9 = por %p2202_p8, %p2201_p5 }
  0x43   : > { %p2204_p0 = pnand %p2203_p9, %p2197_p10 }
  0x45   : > { %2207 = shalt.err (!%p2204_p0)
}
  0x46   : > { %s2208_s27 = scalar_lea.vmem %s353_s0, 128  ;;  %s2328_s18 = smov [#allocation5]  }
  0x47   : > { %p2209_p1 = scmp.ne.s32.totalorder %s353_s0, %s2208_s27  ;;  %s2213_s19 = sshll.u32 %s2328_s18, 4  ;;  %s2214_s19 = int_to_ptr.vmem [resolvable:$false] %s2213_s19 }
  0x48   : > { %s2215_s22 = scalar_lea.vmem %s2214_s19, 256  ;;  %p2216_p6 = scmp.lt.s32.totalorder %s353_s0, %s2214_s19 }
  0x49   : > { %p2211_p11 = pnand %p2209_p1, %p2165_p3  ;;  %p2217_p7 = scmp.lt.s32.totalorder %s2215_s22, %s2208_s27 }
  0x4b   : > { %p2212_p12 = pneg %p2211_p11  ;;  %p2218_p2 = por %p2217_p7, %p2216_p6 }
  0x4d   : > { %p2219_p4 = pnand %p2218_p2, %p2212_p12 }
  0x4f   : > { %2222 = shalt.err (!%p2219_p4)
}
  0x50   : > { %2087 = dma.hbm_to_vmem [thread:$0]  (!%p2474_p13), %s2521_s23, 128, %s353_s0, %s342_s12  }
  0x51   : > { %p2885_p10 = scmp.ne.s32.totalorder %s2882_s28, 0 }
  0x52   : > { %s2548_s20 = sand.u32 (!%p2885_p10), 1, %s2317_s14   ;;  %p2886_p6 = scmp.ne.s32.totalorder (!%p2885_p10), %s2875_s24, 0 }
  0x53   : > { %361 = sbr.rel (%p2885_p10) target bundleno = 4054 (0xfd6), region = 56  ;;  %s2551_s30 = sshll.u32 (!%p2885_p10), %s2548_s20, 3 }
  0x54   : > { %s364_s15 = scalar_lea.sflag (!%p2885_p10), [#allocation3], %s2548_s20  ;;  %s367_s29 = scalar_lea.vmem (!%p2885_p10), [#allocation2], %s2551_s30 }
  0x5a   : > { %2296 = dma.done.wait (%p2886_p6), %s364_s15, 128  }
  0x5b   : > { %2298 = vsyncadd (%p2886_p6), %s364_s15, 4294967168  ;;  %s373_s0 = scalar_lea.sflag [#allocation6], %s2548_s20  ;;  %s376_s21 = scalar_lea.vmem [#allocation5], %s2551_s30 }
  0x5c   : > { %2300 = dma.done.wait (%p2886_p6), %s373_s0, 128  }
  0x5d   : > { %2302 = vsyncadd (%p2886_p6), %s373_s0, 4294967168  ;;  %vm439_vm0 = vcmask 261120   ;;  %v423_v0 = vld [vmem:[%s367_s29] sm:$0xff]  ;;  %v458_v9 = vld [vmem:[%s2854_s2 + $0x10] sm:$0xff]  ;;  %v2329_v10 = vmov 0.0|0.0   ;;  %vm2330_vm1 = vmmov 0   ;;  %v427_v17 = vlaneseq }
  0x5e   : > { %v440_v1 = vsel %vm439_vm0, %v423_v0, 0.0  ;;  %v456_v7 = vld [vmem:[%s2854_s2] sm:$0xff]  ;;  %v457_v8 = vld [vmem:[%s2854_s2 + $0x8] sm:$0xff]  ;;  %2049 = vmatprep.subr.bf16.mxu0 %v2329_v10  ;;  %v459_v12 = vld [vmem:[%s2854_s2 + $0x18] sm:$0xff]  ;;  %v2331_v13 = vmov 0.0   ;;  %s2332_s28 = smov 64  }
  0x5f   : > { %441 = vadd.xlane.f32.xlu0 %v440_v1  ;;  %v2050_v11 = vpack.c.bf16 %v457_v8, %v456_v7  ;;  %1956 = vmatprep.mubr.msk.f32.mxu0 %vm2330_vm1, %v2331_v13  ;;  %v2053_v14 = vpack.c.bf16 %v459_v12, %v458_v9  ;;  %v2587_v19 = vshrl.u32 %v427_v17, 7  ;;  %v2593_v21 = vld [vmem:[%s2857_s5] sm:$0xf]  ;;  %s2333_s23 = smov 96   ;;  %s2334_s12 = smov 88   ;;  %vm543_vm2 = vcmask 64512  }
  0x60   : > { %1964 = vmatprep.subr.mxu1 %v2331_v13  ;;  %1966 = vmatprep.mubr.msk.f32.mxu1 %vm2330_vm1, %v2331_v13  ;;  %v1875_v29 = vld [vmem:[%s2855_s3] ss:$0 sm:$0xff]  ;;  %v2627_v35 = vld [vmem:[%s376_s21] sm:$0xff]  ;;  %s2335_s21 = smov 120   ;;  %s2336_s27 = smov 56   ;;  %v1884_v1 = vld [vmem:[%s2856_s4 + $0x8] sm:$0xff] }
  0x61   : > { %2051 = vmatpush3.bf16.msra.mxu0 %v2050_v11  ;;  %v429_v20 = vsub.s32 0, %v2587_v19  ;;  %v433_v22 = vsub.s32 1, %v2587_v19  ;;  %vm425_vm3 = vcmp.gt.f32.partialorder %v2627_v35, 0.0  ;;  %v708_v51 = vld [vmem:[%s2856_s4] sm:$0xff]  ;;  %s2337_s18 = smov 80   ;;  %s2338_s19 = smov 112  }
  0x62   : > { %2052 = vmatprep.subr.bf16.mxu0 %v2329_v10  ;;  %s2339_s22 = smov 48   ;;  %s2340_s15 = smov 72   ;;  %v1894_v35 = vld [vmem:[%s2856_s4 + $0x18] sm:$0xff]  ;;  %vm1628_vm4 = vcmask 523264  }
  0x63   : > { %v2597_v23 = vrot.slane %v2593_v21, %v429_v20  ;;  %v2600_v25 = vrot.slane %v2593_v21, %v433_v22  ;;  %p2887_p3 = scmp.ne.s32.totalorder %s2876_s25, 0 }
  0x65   : > { %2054 = vmatpush3.bf16.msra.mxu0 %v2053_v14 }
  0x66   : > { %1959 = vmatprep.subr.mxu0 %v2331_v13 }
  0xec   : > { %v442_v2 = vpop.xlane.xlu0 %441 }
  0xed   : > { %v444_v3 = vmul.f32 0.03125, %v442_v2 }
  0xef   : > { %v445_v4 = vsub.f32 %v423_v0, %v444_v3 }
  0xf1   : > { %v446_v5 = vmul.f32 %v445_v4, %v445_v4 }
  0xf3   : > { %v447_v6 = vsel %vm439_vm0, %v446_v5, 0.0 }
  0xf4   : > { %448 = vadd.xlane.f32.xlu0 %v447_v6 }
 0x181   : > { %v449_v15 = vpop.xlane.xlu0 %448 }
 0x182   : > { %v450_v16 = vmul.f32 0.03125, %v449_v15 }
 0x184   : > { %v451_v18 = vadd.f32 1e-05, %v450_v16 }
 0x186   : > { %2143 = vrsqrt.f32 %v451_v18 }
 0x190   : > { %v2144_v24 = vpop.eup %2143 }
 0x191   : > { %v453_v26 = vmul.f32 %v2144_v24, %v445_v4 }
 0x193   : > { %v454_v27 = vmul.f32 %v453_v26, %v2597_v23 }
 0x195   : > { %v2604_v28 = vadd.f32 %v454_v27, %v2600_v25 }
 0x197   : > { %1957 = vmatmul.mubr.msk.f32.vlgmr.msra.gmra.mrb[0].mxu0 %vm439_vm0, %v2604_v28 }
 0x198   : > { %1961 = vmatprep.mubr.msk.f32.mxu0 %vm2330_vm1, %v2331_v13 }
 0x26a   : > { %v536_v30 = vpop.f32.mrb[0].mxu0 }
 0x26b   : > { %v2613_v31 = vadd.f32 %v1875_v29, %v536_v30  ;;  %v1958_v32 = vpop.f32.mrb[1].mxu0  ;;  %v437_v29 = vsub.s32 2, %v2587_v19 }
 0x26d   : > { %632 = vrot.lane.b32.xlu0 %v2613_v31, %s2332_s28  ;;  %541 = vrot.lane.b32.xlu1 %v2613_v31, %s2333_s23  ;;  %s2341_s28 = smov 104   ;;  %v438_v30 = vrot.slane %v2593_v21, %v437_v29  ;;  %s1712_s23 = scalar_lea.sflag [#allocation9], %s2548_s20 }
 0x271   : > { %785 = vrot.lane.b32.xlu0 %v2613_v31, %s2334_s12 }
 0x2df   : > { %v633_v33 = vpop.permute.xlu0 %632  ;;  %v542_v34 = vpop.permute.xlu1 %541 }
 0x2e0   : > { %1960 = vmatpush3.xpose.msk.msra.mxu0 %vm543_vm2, %v542_v34  ;;  %1965 = vmatpush3.msra.mxu1 %v633_v33 }
 0x2e1   : > { %1974 = vmatprep.subr.mxu1 %v2331_v13  ;;  %1969 = vmatprep.subr.mxu0 %v2331_v13 }
 0x2e3   : > { %1962 = vmatmul.mubr.msk.f32.vlgmr.msra.gmra.mrb[2].mxu0 %vm543_vm2, %v2613_v31  ;;  %v786_v46 = vpop.permute.xlu0 %785 }
 0x2e4   : > { %1971 = vmatprep.mubr.msk.f32.mxu0 %vm2330_vm1, %v2331_v13  ;;  %1970 = vmatpush3.msra.mxu0 %v708_v51 }
 0x2e5   : > { %1979 = vmatprep.subr.mxu0 %v2331_v13 }
 0x3b6   : > { %v614_v36 = vpop.f32.mrb[2].mxu0 }
 0x3b7   : > { %v618_v37 = vmul.f32 0.35355338, %v614_v36  ;;  %v1963_v38 = vpop.f32.mrb[3].mxu0 }
 0x3b9   : > { %v619_v39 = vsel %vm425_vm3, -1e+09, %v618_v37 }
 0x3ba   : > { %v620_v40 = vsel %vm543_vm2, %v619_v39, -inf }
 0x3bb   : > { %621 = vmax.xlane.f32.xlu1 %v620_v40 }
 0x448   : > { %v622_v41 = vpop.xlane.xlu1 %621 }
 0x449   : > { %v623_v42 = vsub.f32 %v619_v39, %v622_v41 }
 0x44b   : > { %v624_v43 = vmul.f32 1.442695, %v623_v42 }
 0x44d   : > { %2145 = vpow2.f32 %v624_v43 }
 0x457   : > { %v2146_v44 = vpop.eup %2145 }
 0x458   : > { %v626_v45 = vsel %vm543_vm2, %v2146_v44, 0.0 }
 0x459   : > { %627 = vadd.xlane.f32.xlu0 %v626_v45 }
 0x46f   : > { %783 = vrot.lane.b32.xlu0 %v2613_v31, %s2335_s21  ;;  %s2342_s21 = smov 40  }
 0x4e6   : > { %v628_v47 = vpop.xlane.xlu0 %627 }
 0x4e7   : > { %2147 = vrcp.f32 %v628_v47 }
 0x4ea   : > { %v784_v50 = vpop.permute.xlu0 %783 }
 0x4f1   : > { %v2148_v48 = vpop.eup %2147 }
 0x4f2   : > { %v2635_v49 = vmul.f32 %v2148_v48, %v2146_v44  ;;  %v1889_v44 = vld [vmem:[%s2856_s4 + $0x10] sm:$0xff] }
 0x4f4   : > { %1967 = vmatmul.mubr.msk.f32.vlgmr.msra.gmra.mrb[0].mxu1 %vm543_vm2, %v2635_v49 }
 0x4f5   : > { %1975 = vmatpush3.xpose.msk.msra.mxu1 %vm543_vm2, %v786_v46  ;;  %1976 = vmatprep.mubr.msk.f32.mxu1 %vm2330_vm1, %v2331_v13 }
 0x4f6   : > { %1984 = vmatprep.subr.mxu1 %v2331_v13 }
 0x4f8   : > { %1977 = vmatmul.mubr.msk.f32.vlgmr.msra.gmra.mrb[2].mxu1 %vm543_vm2, %v784_v50 }
 0x4f9   : > { %1986 = vmatprep.mubr.msk.f32.mxu1 %vm2330_vm1, %v2331_v13  ;;  %1985 = vmatpush3.msra.mxu1 %v1884_v1 }
 0x4fa   : > { %1994 = vmatprep.subr.mxu1 %v2331_v13 }
 0x5c7   : > { %v704_v52 = vpop.f32.mrb[0].mxu1 }
 0x5c8   : > { %v1968_v53 = vpop.f32.mrb[1].mxu1  ;;  %1972 = vmatmul.mubr.msk.f32.vlgmr.msra.gmra.mrb[4].mxu0 %vm543_vm2, %v704_v52 }
 0x5c9   : > { %1981 = vmatprep.mubr.msk.f32.mxu0 %vm2330_vm1, %v2331_v13 }
 0x5cb   : > { %v857_v54 = vpop.f32.mrb[2].mxu1 }
 0x5cc   : > { %v861_v55 = vmul.f32 0.35355338, %v857_v54  ;;  %v1978_v56 = vpop.f32.mrb[3].mxu1 }
 0x5ce   : > { %v862_v57 = vsel %vm425_vm3, -1e+09, %v861_v55 }
 0x5cf   : > { %v863_v58 = vsel %vm543_vm2, %v862_v57, -inf }
 0x5d0   : > { %864 = vmax.xlane.f32.xlu1 %v863_v58 }
 0x5e1   : > { %875 = vrot.lane.b32.xlu1 %v2613_v31, %s2336_s27  ;;  %s422_s27 = scalar_lea.vmem [#allocation8], %s2551_s30 }
 0x5e5   : > { %1029 = vrot.lane.b32.xlu1 %v2613_v31, %s2337_s18 }
 0x5e9   : > { %1027 = vrot.lane.b32.xlu1 %v2613_v31, %s2338_s19 }
 0x65d   : > { %v865_v59 = vpop.xlane.xlu1 %864 }
 0x65e   : > { %v866_v60 = vsub.f32 %v862_v57, %v865_v59 }
 0x660   : > { %v867_v61 = vmul.f32 1.442695, %v866_v60 }
 0x661   : > { %v876_v62 = vpop.permute.xlu1 %875 }
 0x662   : > { %2149 = vpow2.f32 %v867_v61  ;;  %1980 = vmatpush3.msra.mxu0 %v876_v62 }
 0x663   : > { %1989 = vmatprep.subr.mxu0 %v2331_v13 }
 0x665   : > { %v1030_v6 = vpop.permute.xlu1 %1029 }
 0x669   : > { %v1028_v8 = vpop.permute.xlu1 %1027 }
 0x66c   : > { %v2150_v63 = vpop.eup %2149 }
 0x66d   : > { %v869_v0 = vsel %vm543_vm2, %v2150_v63, 0.0 }
 0x66e   : > { %870 = vadd.xlane.f32.xlu0 %v869_v0 }
 0x684   : > { %1119 = vrot.lane.b32.xlu0 %v2613_v31, %s2339_s22  ;;  %s1901_s22 = sshll.u32 %s2421_s17, 7 }
 0x685   : > { %s2777_s0 = scalar_lea.hbm %s2862_s10, %s1901_s22 }
 0x688   : > { %1273 = vrot.lane.b32.xlu0 %v2613_v31, %s2340_s15 }
 0x69b   : > { %v778_v2 = vpop.f32.mrb[4].mxu0 }
 0x69c   : > { %v1973_v3 = vpop.f32.mrb[5].mxu0  ;;  %v782_v32 = vadd.f32 %v778_v2, %v438_v30  ;;  %v1620_v30 = vld [vmem:[%s2860_s8 + $0x20] sm:$0xff] }
 0x6fb   : > { %v871_v4 = vpop.xlane.xlu0 %870 }
 0x6fc   : > { %2151 = vrcp.f32 %v871_v4 }
 0x6ff   : > { %v1120_v11 = vpop.permute.xlu0 %1119 }
 0x703   : > { %v1274_v37 = vpop.permute.xlu0 %1273 }
 0x706   : > { %v2152_v5 = vpop.eup %2151 }
 0x707   : > { %v873_v7 = vmul.f32 %v2152_v5, %v2150_v63 }
 0x709   : > { %1982 = vmatmul.mubr.msk.f32.vlgmr.msra.gmra.mrb[6].mxu0 %vm543_vm2, %v873_v7  ;;  %v874_v40 = vadd.f32 %v873_v7, %v2635_v49 }
 0x70a   : > { %1990 = vmatpush3.xpose.msk.msra.mxu0 %vm543_vm2, %v1030_v6  ;;  %1991 = vmatprep.mubr.msk.f32.mxu0 %vm2330_vm1, %v2331_v13 }
 0x70b   : > { %1999 = vmatprep.subr.mxu0 %v2331_v13 }
 0x70d   : > { %1992 = vmatmul.mubr.msk.f32.vlgmr.msra.gmra.mrb[8].mxu0 %vm543_vm2, %v1028_v8 }
 0x70e   : > { %2001 = vmatprep.mubr.msk.f32.mxu0 %vm2330_vm1, %v2331_v13  ;;  %2000 = vmatpush3.msra.mxu0 %v1889_v44 }
 0x70f   : > { %2009 = vmatprep.subr.mxu0 %v2331_v13 }
 0x7dc   : > { %v947_v9 = vpop.f32.mrb[6].mxu0 }
 0x7dd   : > { %v1983_v12 = vpop.f32.mrb[7].mxu0  ;;  %1987 = vmatmul.mubr.msk.f32.vlgmr.msra.gmra.mrb[4].mxu1 %vm543_vm2, %v947_v9 }
 0x7de   : > { %1995 = vmatpush3.msra.mxu1 %v1120_v11  ;;  %1996 = vmatprep.mubr.msk.f32.mxu1 %vm2330_vm1, %v2331_v13 }
 0x7df   : > { %2004 = vmatprep.subr.mxu1 %v2331_v13 }
 0x7e0   : > { %v1101_v14 = vpop.f32.mrb[8].mxu0 }
 0x7e1   : > { %v1105_v15 = vmul.f32 0.35355338, %v1101_v14  ;;  %v1993_v16 = vpop.f32.mrb[9].mxu0 }
 0x7e3   : > { %v1106_v17 = vsel %vm425_vm3, -1e+09, %v1105_v15  ;;  %v1531_v15 = vld [vmem:[%s2858_s6] sm:$0xff] }
 0x7e4   : > { %v1107_v18 = vsel %vm543_vm2, %v1106_v17, -inf }
 0x7e5   : > { %1108 = vmax.xlane.f32.xlu1 %v1107_v18 }
 0x872   : > { %v1109_v20 = vpop.xlane.xlu1 %1108 }
 0x873   : > { %v1110_v22 = vsub.f32 %v1106_v17, %v1109_v20  ;;  %v1534_v17 = vld [vmem:[%s2858_s6 + $0x18] sm:$0xff]  ;;  %v1616_v20 = vld [vmem:[%s2860_s8] sm:$0xff] }
 0x875   : > { %v1111_v24 = vmul.f32 1.442695, %v1110_v22  ;;  %v1617_v22 = vld [vmem:[%s2860_s8 + $0x8] sm:$0xff] }
 0x877   : > { %2153 = vpow2.f32 %v1111_v24  ;;  %v1618_v24 = vld [vmem:[%s2860_s8 + $0x10] sm:$0xff] }
 0x881   : > { %v2154_v26 = vpop.eup %2153 }
 0x882   : > { %v1113_v27 = vsel %vm543_vm2, %v2154_v26, 0.0 }
 0x883   : > { %1114 = vadd.xlane.f32.xlu0 %v1113_v27  ;;  %v1619_v27 = vld [vmem:[%s2860_s8 + $0x18] sm:$0xff] }
 0x884   : > { %v2065_v29 = vpack.c.bf16 %v1619_v27, %v1618_v24 }
 0x899   : > { %1271 = vrot.lane.b32.xlu0 %v2613_v31, %s2341_s28  ;;  %s1738_s28 = sshll.u32 %s422_s27, 4  ;;  %s1739_s28 = int_to_ptr.vmem [resolvable:$true] %s1738_s28 }
 0x89a   : > { %s2223_s12 = scalar_lea.vmem %s1739_s28, 128 }
 0x89b   : > { %p2224_p13 = scmp.ne.s32.totalorder %s1739_s28, %s2223_s12 }
 0x89d   : > { %p2225_p7 = pnand %p2224_p13, %p2887_p3 }
 0x89f   : > { %p2226_p5 = pneg %p2225_p7 }
 0x8b0   : > { %v1022_v33 = vpop.f32.mrb[4].mxu1 }
 0x8b1   : > { %v1026_v34 = vadd.f32 %v1022_v33, %v782_v32  ;;  %v1988_v36 = vpop.f32.mrb[5].mxu1  ;;  %v1621_v32 = vld [vmem:[%s2860_s8 + $0x28] sm:$0xff] }
 0x8b2   : > { %v2068_v33 = vpack.c.bf16 %v1621_v32, %v1620_v30 }
 0x910   : > { %v1115_v38 = vpop.xlane.xlu0 %1114 }
 0x911   : > { %2155 = vrcp.f32 %v1115_v38 }
 0x914   : > { %v1272_v43 = vpop.permute.xlu0 %1271 }
 0x91b   : > { %v2156_v39 = vpop.eup %2155 }
 0x91c   : > { %v1117_v41 = vmul.f32 %v2156_v39, %v2154_v26  ;;  %v2062_v26 = vpack.c.bf16 %v1617_v22, %v1616_v20 }
 0x91e   : > { %v1118_v42 = vadd.f32 %v1117_v41, %v874_v40  ;;  %1997 = vmatmul.mubr.msk.f32.vlgmr.msra.gmra.mrb[6].mxu1 %vm543_vm2, %v1117_v41 }
 0x91f   : > { %2005 = vmatpush3.xpose.msk.msra.mxu1 %vm543_vm2, %v1274_v37  ;;  %2006 = vmatprep.mubr.msk.f32.mxu1 %vm2330_vm1, %v2331_v13 }
 0x920   : > { %2014 = vmatprep.subr.mxu1 %v2331_v13 }
 0x922   : > { %2007 = vmatmul.mubr.msk.f32.vlgmr.msra.gmra.mrb[8].mxu1 %vm543_vm2, %v1272_v43 }
 0x923   : > { %2016 = vmatprep.mubr.msk.f32.mxu1 %vm2330_vm1, %v2331_v13  ;;  %2015 = vmatpush3.msra.mxu1 %v1894_v35 }
 0x924   : > { %2061 = vmatprep.subr.bf16.mxu1 %v2329_v10 }
 0x9f1   : > { %v1191_v45 = vpop.f32.mrb[6].mxu1 }
 0x9f2   : > { %v1998_v46 = vpop.f32.mrb[7].mxu1  ;;  %2002 = vmatmul.mubr.msk.f32.vlgmr.msra.gmra.mrb[10].mxu0 %vm543_vm2, %v1191_v45 }
 0x9f3   : > { %2011 = vmatprep.mubr.msk.f32.mxu0 %vm2330_vm1, %v2331_v13 }
 0x9f5   : > { %v1345_v47 = vpop.f32.mrb[8].mxu1 }
 0x9f6   : > { %v1349_v48 = vmul.f32 0.35355338, %v1345_v47  ;;  %v2008_v49 = vpop.f32.mrb[9].mxu1 }
 0x9f8   : > { %v1350_v50 = vsel %vm425_vm3, -1e+09, %v1349_v48 }
 0x9f9   : > { %v1351_v51 = vsel %vm543_vm2, %v1350_v50, -inf }
 0x9fa   : > { %1352 = vmax.xlane.f32.xlu1 %v1351_v51 }
 0xa0b   : > { %1363 = vrot.lane.b32.xlu1 %v2613_v31, %s2342_s21  ;;  %s2343_s21 = smov [#allocation8]  }
 0xa0c   : > { %s2227_s11 = sshll.u32 %s2343_s21, 4  ;;  %s2228_s11 = int_to_ptr.vmem [resolvable:$false] %s2227_s11 }
 0xa0d   : > { %s2229_s24 = scalar_lea.vmem %s2228_s11, 256  ;;  %p2230_p8 = scmp.lt.s32.totalorder %s1739_s28, %s2228_s11 }
 0xa0e   : > { %p2231_p9 = scmp.lt.s32.totalorder %s2229_s24, %s2223_s12 }
 0xa10   : > { %p2232_p0 = por %p2231_p9, %p2230_p8 }
 0xa12   : > { %p2233_p1 = pnand %p2232_p0, %p2226_p5 }
 0xa87   : > { %v1353_v52 = vpop.xlane.xlu1 %1352 }
 0xa88   : > { %v1354_v53 = vsub.f32 %v1350_v50, %v1353_v52 }
 0xa8a   : > { %v1355_v54 = vmul.f32 1.442695, %v1354_v53 }
 0xa8b   : > { %v1364_v55 = vpop.permute.xlu1 %1363 }
 0xa8c   : > { %2157 = vpow2.f32 %v1355_v54  ;;  %2010 = vmatpush3.msra.mxu0 %v1364_v55 }
 0xa8d   : > { %2055 = vmatprep.subr.bf16.mxu0 %v2329_v10 }
 0xa96   : > { %v2158_v56 = vpop.eup %2157 }
 0xa97   : > { %v1357_v57 = vsel %vm543_vm2, %v2158_v56, 0.0 }
 0xa98   : > { %1358 = vadd.xlane.f32.xlu0 %v1357_v57 }
 0xac5   : > { %v1266_v31 = vpop.f32.mrb[10].mxu0 }
 0xac6   : > { %v1270_v58 = vadd.f32 %v1266_v31, %v1026_v34  ;;  %v2003_v59 = vpop.f32.mrb[11].mxu0 }
 0xb25   : > { %v1359_v60 = vpop.xlane.xlu0 %1358 }
 0xb26   : > { %2159 = vrcp.f32 %v1359_v60 }
 0xb30   : > { %v2160_v61 = vpop.eup %2159 }
 0xb31   : > { %v1361_v62 = vmul.f32 %v2160_v61, %v2158_v56 }
 0xb33   : > { %v1362_v63 = vadd.f32 %v1361_v62, %v1118_v42  ;;  %2012 = vmatmul.mubr.msk.f32.vlgmr.msra.gmra.mrb[12].mxu0 %vm543_vm2, %v1361_v62  ;;  %v1623_v42 = vld [vmem:[%s2860_s8 + $0x38] sm:$0xff] }
 0xb34   : > { %2027 = vmatprep.mubr.msk.f32.mxu0 %vm2330_vm1, %v2331_v13 }
 0xb35   : > { %v1704_v0 = vmul.f32 0.25, %v1362_v63 }
 0xb37   : > { %1705 = vst.msk [vmem:[%s422_s27] sm:$0xff] %vm543_vm2, %v1704_v0 }
 0xc06   : > { %v1435_v1 = vpop.f32.mrb[12].mxu0 }
 0xc07   : > { %v2013_v2 = vpop.f32.mrb[13].mxu0  ;;  %2017 = vmatmul.mubr.msk.f32.vlgmr.msra.gmra.mrb[10].mxu1 %vm543_vm2, %v1435_v1 }
 0xc08   : > { %2046 = vmatprep.mubr.msk.f32.mxu1 %vm2330_vm1, %v2331_v13  ;;  %v1532_v13 = vld [vmem:[%s2858_s6 + $0x8] sm:$0xff]  ;;  %2063 = vmatpush3.bf16.msra.mxu1 %v2062_v26 }
 0xc09   : > { %v2056_v16 = vpack.c.bf16 %v1532_v13, %v1531_v15  ;;  %2064 = vmatprep.subr.bf16.mxu1 %v2329_v10 }
 0xc0b   : > { %2057 = vmatpush3.bf16.msra.mxu0 %v2056_v16 }
 0xc0c   : > { %2058 = vmatprep.subr.bf16.mxu0 %v2329_v10  ;;  %2066 = vmatpush3.bf16.msra.mxu1 %v2065_v29 }
 0xc0d   : > { %2067 = vmatprep.subr.bf16.mxu1 %v2329_v10 }
 0xc10   : > { %2069 = vmatpush3.bf16.msra.mxu1 %v2068_v33 }
 0xc11   : > { %2070 = vmatprep.subr.bf16.mxu1 %v2329_v10  ;;  %v1622_v10 = vld [vmem:[%s2860_s8 + $0x30] sm:$0xff] }
 0xc12   : > { %v2071_v43 = vpack.c.bf16 %v1623_v42, %v1622_v10 }
 0xc14   : > { %2072 = vmatpush3.bf16.msra.mxu1 %v2071_v43 }
 0xcda   : > { %v1510_v3 = vpop.f32.mrb[10].mxu1 }
 0xcdb   : > { %v1514_v4 = vadd.f32 %v1510_v3, %v1270_v58  ;;  %v2018_v5 = vpop.f32.mrb[11].mxu1 }
 0xcdd   : > { %v1515_v6 = vadd.f32 %v1514_v4, %v2604_v28  ;;  %v1533_v28 = vld [vmem:[%s2858_s6 + $0x10] sm:$0xff] }
 0xcde   : > { %v2059_v18 = vpack.c.bf16 %v1534_v17, %v1533_v28 }
 0xcdf   : > { %v1516_v7 = vsel %vm439_vm0, %v1515_v6, 0.0 }
 0xce0   : > { %1517 = vadd.xlane.f32.xlu1 %v1516_v7  ;;  %2060 = vmatpush3.bf16.msra.mxu0 %v2059_v18 }
 0xd6d   : > { %v1518_v8 = vpop.xlane.xlu1 %1517 }
 0xd6e   : > { %v1519_v9 = vmul.f32 0.03125, %v1518_v8 }
 0xd70   : > { %v1520_v11 = vsub.f32 %v1515_v6, %v1519_v9 }
 0xd72   : > { %v1521_v12 = vmul.f32 %v1520_v11, %v1520_v11 }
 0xd74   : > { %v1522_v14 = vsel %vm439_vm0, %v1521_v12, 0.0 }
 0xd75   : > { %1523 = vadd.xlane.f32.xlu0 %v1522_v14 }
 0xe02   : > { %v1524_v34 = vpop.xlane.xlu0 %1523 }
 0xe03   : > { %v1525_v36 = vmul.f32 0.03125, %v1524_v34 }
 0xe05   : > { %v1526_v37 = vadd.f32 1e-05, %v1525_v36 }
 0xe07   : > { %2161 = vrsqrt.f32 %v1526_v37 }
 0xe11   : > { %v2162_v38 = vpop.eup %2161 }
 0xe12   : > { %v1528_v39 = vmul.f32 %v2162_v38, %v1520_v11 }
 0xe14   : > { %v1529_v40 = vmul.f32 %v1528_v39, %v2597_v23  ;;  %v1896_v23 = vld [vmem:[%s2859_s7] ss:$0 sm:$0xff] }
 0xe16   : > { %v1530_v41 = vadd.f32 %v1529_v40, %v2600_v25 }
 0xe18   : > { %2028 = vmatmul.mubr.msk.f32.vlgmr.msra.gmra.mrb[14].mxu0 %vm439_vm0, %v1530_v41 }
 0xeeb   : > { %v1611_v44 = vpop.f32.mrb[14].mxu0 }
 0xeec   : > { %v1612_v25 = vadd.f32 %v1896_v23, %v1611_v44  ;;  %v2029_v45 = vpop.f32.mrb[15].mxu0 }
 0xeee   : > { %v1615_v46 = vmax.f32 %v1612_v25, 0.0 }
 0xef0   : > { %2047 = vmatmul.mubr.msk.f32.vlgmr.msra.gmra.mrb[12].mxu1 %vm1628_vm4, %v1615_v46 }
 0xef1   : > { %2236 = shalt.err (!%p2233_p1)
}
 0xef2   : > { %s2237_s27 = scalar_lea.hbm %s2777_s0, 128  ;;  %s2241_s15 = scalar_lea.hbm %s2862_s10, 256 }
 0xef3   : > { %p2238_p11 = scmp.ne.s32.totalorder %s2777_s0, %s2237_s27  ;;  %p2242_p4 = scmp.lt.u32.totalorder %s2777_s0, %s2862_s10 }
 0xef4   : > { %p2243_p10 = scmp.lt.u32.totalorder %s2241_s15, %s2237_s27  ;;  %p2245_p13 = scmp.lt.u32.totalorder %s2237_s27, %s2777_s0 }
 0xef5   : > { %p2239_p12 = pnand %p2238_p11, %p2887_p3 }
 0xef6   : > { %p2244_p6 = por %p2243_p10, %p2242_p4 }
 0xef7   : > { %p2240_p2 = pneg %p2239_p12 }
 0xef8   : > { %p2246_p7 = por %p2245_p13, %p2244_p6 }
 0xefa   : > { %p2247_p5 = pnand %p2246_p7, %p2240_p2 }
 0xefc   : > { %2250 = shalt.err (!%p2247_p5)
}
 0xefd   : > { %2078 = dma.vmem_to_hbm [thread:$0]  (%p2887_p3), %s1739_s28, 128, %s2777_s0, %s1712_s23   ;;  %v1626_v47 = vsub.s32 3, %v2587_v19 }
 0xefe   : > { %s415_s12 = scalar_lea.vmem [#allocation7], %s2551_s30  ;;  %s2807_s18 = scalar_lea.hbm %s2861_s9, %s1901_s22 }
 0xeff   : > { %v1627_v48 = vrot.slane %v2593_v21, %v1626_v47  ;;  %s1725_s11 = sshll.u32 %s415_s12, 4  ;;  %s1707_s0 = scalar_lea.sflag [#allocation4], %s2548_s20  ;;  %s2809_s11 = int_to_ptr.vmem [resolvable:$true] %s1725_s11 }
 0xf00   : > { %s2251_s28 = scalar_lea.vmem %s2809_s11, 128  ;;  %s2344_s30 = smov [#allocation7]  }
 0xf01   : > { %p2252_p8 = scmp.ne.s32.totalorder %s2809_s11, %s2251_s28  ;;  %s2255_s17 = sshll.u32 %s2344_s30, 4  ;;  %s2256_s17 = int_to_ptr.vmem [resolvable:$false] %s2255_s17 }
 0xf02   : > { %s2257_s23 = scalar_lea.vmem %s2256_s17, 256  ;;  %p2258_p1 = scmp.lt.s32.totalorder %s2809_s11, %s2256_s17 }
 0xf03   : > { %p2253_p9 = pnand %p2252_p8, %p2887_p3  ;;  %p2259_p11 = scmp.lt.s32.totalorder %s2257_s23, %s2251_s28 }
 0xf05   : > { %p2254_p0 = pneg %p2253_p9  ;;  %p2260_p12 = por %p2259_p11, %p2258_p1 }
 0xf07   : > { %p2261_p2 = pnand %p2260_p12, %p2254_p0 }
 0xfc3   : > { %v1698_v49 = vpop.f32.mrb[12].mxu1 }
 0xfc4   : > { %v1699_v50 = vadd.f32 %v1698_v49, %v1627_v48  ;;  %v2048_v51 = vpop.f32.mrb[13].mxu1 }
 0xfc6   : > { %v1702_v52 = vadd.f32 %v1699_v50, %v1530_v41 }
 0xfc8   : > { %1703 = vst.msk [vmem:[%s415_s12] sm:$0xff] %vm439_vm0, %v1702_v52 }
 0xfc9   : > { %2264 = shalt.err (!%p2261_p2)
}
 0xfca   : > { %s2265_s20 = scalar_lea.hbm %s2807_s18, 128  ;;  %s2269_s15 = scalar_lea.hbm %s2861_s9, 256 }
 0xfcb   : > { %p2266_p4 = scmp.ne.s32.totalorder %s2807_s18, %s2265_s20  ;;  %p2270_p13 = scmp.lt.u32.totalorder %s2807_s18, %s2861_s9 }
 0xfcc   : > { %p2271_p7 = scmp.lt.u32.totalorder %s2269_s15, %s2265_s20  ;;  %p2273_p8 = scmp.lt.u32.totalorder %s2265_s20, %s2807_s18 }
 0xfcd   : > { %p2267_p10 = pnand %p2266_p4, %p2887_p3 }
 0xfce   : > { %p2272_p5 = por %p2271_p7, %p2270_p13 }
 0xfcf   : > { %p2268_p6 = pneg %p2267_p10 }
 0xfd0   : > { %p2274_p9 = por %p2273_p8, %p2272_p5 }
 0xfd2   : > { %p2275_p0 = pnand %p2274_p9, %p2268_p6 }
 0xfd4   : > { %2278 = shalt.err (!%p2275_p0)
}
 0xfd5   : > { %2077 = dma.vmem_to_hbm [thread:$0]  (%p2887_p3), %s2809_s11, 128, %s2807_s18, %s1707_s0  }
 0xfd6 PF: > { %s1750_s12 = sand.u32 1, %s2313_s13   ;;  %p2888_p1 = scmp.ne.s32.totalorder %s2877_s26, 0 }
 0xfd7   : > { %p2889_p11 = scmp.ge.s32.totalorder %s2325_s16, 2  ;;  %s1751_s24 = scalar_lea.sflag [#allocation4], %s1750_s12 }
 0xfd9   : > { %p2089_p12 = pnand %p2889_p11, %p2888_p1 }
 0xfdb   : > { %2304 = dma.done.wait (!%p2089_p12), %s1751_s24, 128  }
 0xfdc   : > { %2306 = vsyncadd (!%p2089_p12), %s1751_s24, 4294967168  ;;  %s1760_s27 = scalar_lea.sflag [#allocation9], %s1750_s12 }
 0xfdd   : > { %2308 = dma.done.wait (!%p2089_p12), %s1760_s27, 128  }
 0xfde   : > { %2310 = vsyncadd (!%p2089_p12), %s1760_s27, 4294967168  ;;  %s2890_s16 = sld [smem:[#allocation15_spill]]  ;;  %s2891_s25 = sld [smem:[#allocation14_spill]] }
 0xfdf   : > { %s2892_s15 = sld [smem:[#allocation16_spill]]  ;;  %s2893_s13 = smov %s2317_s14 }
 0xfe4   : > { %p30_p3 = scmp.ge.s32.totalorder %s2890_s16, 4   ;;  %s2894_s14 = smov %s2891_s25 }
 0xfe6   :  { %32 = sbr.rel (!%p30_p3) target bundleno = 11 (0xb), region = 134 }
 0xfed   :  { %1765 = vsyncpa [#allocation3], 1 }
 0xfee   :  { %1767 = vsyncpa [#allocation3 + $0x1], 1 }
 0xfef   :  { %1768 = vsyncpa [#allocation6], 1 }
 0xff0   :  { %1770 = vsyncpa [#allocation6 + $0x1], 1 }
 0xff1   :  { %1771 = vsyncpa [#allocation4], 1 }
 0xff2   :  { %1773 = vsyncpa [#allocation4 + $0x1], 1 }
 0xff3   :  { %1774 = vsyncpa [#allocation9], 1 }
 0xff4   :  { %1776 = vsyncpa [#allocation9 + $0x1], 1 }

</bundles_post_ra>
